<compile_context>
chip_gen: v6e
topology: v6e:2x2x1
jax: 0.10.0
libtpu: 0.0.40
codegen_flags: <defaults>
</compile_context>

<pallas_src>
import functools

import jax
import jax.numpy as jnp
from jax.experimental import pallas as pl
from jax.experimental.pallas import tpu as pltpu


def _attention_kernel(q_ref, keys_ref, wq_ref, wk_ref, wv_ref, *out_refs,
                      mm_dtype, tanh_dtype, flat_k_reshape, store_attw):
    # q_ref:   (TB, H) f32    keys_ref: (TB, S, H) f32
    # wq_ref:  (H, H)         wk_ref:   (H, H)        (pre-cast to mm_dtype)
    # wv_ref:  (1, H) f32
    # out_refs: (ctx_ref (TB, H) [, attw_ref (TB, S)])
    ctx_ref = out_refs[0]
    attw_ref = out_refs[1] if store_attw else None
    TB, S, H = keys_ref.shape

    q = q_ref[...]                       # (TB, H)  f32
    keys = keys_ref[...]                 # (TB, S, H) f32 — HBM/VMEM stays f32

    # --- Projections (Linear, bias=False): x @ W^T -----------------------------
    # In-kernel cast to the matmul dtype: bf16 halves MXU time on v6e/v7x with f32
    # accumulation, and costs zero extra HBM traffic vs a wrapper-side cast.
    qp = jnp.dot(q.astype(mm_dtype), wq_ref[...],
                 preferred_element_type=jnp.float32)                    # (TB, H) f32
    k_mm = keys.astype(mm_dtype)
    if flat_k_reshape:
        # Collapsing (TB, S) is only free when S is sublane-pack aligned for mm_dtype;
        # otherwise Mosaic would materialize a relayout copy of the full slab.
        kp = jnp.dot(k_mm.reshape(TB * S, H), wk_ref[...],
                     preferred_element_type=jnp.float32).reshape(TB, S, H)
    else:
        kp = jnp.einsum("bsh,ho->bso", k_mm, wk_ref[...],
                        preferred_element_type=jnp.float32)              # (TB, S, H)

    # --- energy = w_v . tanh(w_q(q) + w_k(k)) ----------------------------------
    # tanh is the saturating EUP slot at these shapes; run it in bf16 where the EUP
    # is bf16-capable (v6e/v7x), f32 on v5e.  Reduce against lane-dense w_v on the
    # VPU + XLU instead of a degenerate N=1 matmul.
    t = jnp.tanh((qp[:, None, :] + kp).astype(tanh_dtype)).astype(jnp.float32)
    wv = wv_ref[...].reshape(1, 1, H)                                    # (1,1,H) f32
    e = jnp.sum(t * wv, axis=-1)                                         # (TB, S) f32

    # --- softmax over the sequence axis, kept on the lane axis -----------------
    m = jnp.max(e, axis=-1, keepdims=True)                               # (TB, 1)
    p = jnp.exp(e - m)                                                   # (TB, S)
    s = jnp.sum(p, axis=-1, keepdims=True)                               # (TB, 1)
    r = pl.reciprocal(s, approx=True)      # EUP slot, otherwise idle
    r = r * (2.0 - s * r)                  # one Newton step -> ~f32-exact reciprocal
    w = p * r                                                            # (TB, S)

    if store_attw:
        attw_ref[...] = w.astype(attw_ref.dtype)      # direct lane-major store

    # --- context_vector[b] = sum_s keys[b, s, :] * w[b, s] ----------------------
    # keys stay true f32 here regardless of the matmul dtype.
    ctx = jnp.sum(keys * w[:, :, None], axis=1)                          # (TB, H) f32
    ctx_ref[...] = ctx.astype(ctx_ref.dtype)


def _per_row_vmem_bytes(S, H, use_bf16):
    """Per-batch-row VMEM bytes: 2 double-buffered keys tiles (f32) + ~4 (S,H) f32
    in-kernel temporaries (kp, tanh pre/post, ctx-multiply slab) + optional bf16 cast
    copy + query / qp / ctx / attw tiles."""
    b = (2 + 4) * S * H * 4
    if use_bf16:
        b += S * H * 2
    b += 4 * H * 4 + 4 * S * 4 + 128
    return b


def _choose_block_b(B, S, H, *, pack, use_bf16, vmem_budget_bytes, target_rows=512):
    per_row = _per_row_vmem_bytes(S, H, use_bf16)
    fit = max(pack, int(vmem_budget_bytes // per_row))
    tb = min(B, target_rows, fit)
    if tb < B:
        tb = max(pack, (tb // pack) * pack)           # pack-aligned partial tiles
    elif B >= 2 * pack:
        # Split the batch into >= 2 tiles so the 'parallel' grid axis can shard
        # across v7x's two TensorCores (costs nothing on 1-TC v5e/v6e).
        half = -(-B // 2)                             # ceil(B / 2)
        tb = min(B, -(-half // pack) * pack)          # round up to the sublane pack
    return tb


def attention_forward(query, keys, w_q, w_k, w_v, *, block_b=None, use_bf16=False,
                      bf16_tanh=None, return_attention_weights=True,
                      vmem_budget_bytes=28 << 20):
    """query: (B, H), keys: (B, S, H).
    w_q: (H, H), w_k: (H, H), w_v: (1, H) -- PyTorch Linear weight layout (out, in).
    Returns (context_vector (B, H), attention_weights (B, S) or None)."""
    B, H = query.shape
    _, S, _ = keys.shape
    f32 = jnp.float32

    mm_dtype = jnp.bfloat16 if use_bf16 else f32      # matmul-input dtype only
    if bf16_tanh is None:
        bf16_tanh = use_bf16        # v6e/v7x: bf16 EUP; pass False explicitly on v5e
    tanh_dtype = jnp.bfloat16 if bf16_tanh else f32
    pack = 16 if use_bf16 else 8                      # sublane pack of matmul dtype

    if block_b is None:
        block_b = _choose_block_b(B, S, H, pack=pack, use_bf16=use_bf16,
                                  vmem_budget_bytes=vmem_budget_bytes)
    else:
        block_b = min(block_b, B)
        if block_b < B and block_b % pack != 0:
            block_b = max(pack, (block_b // pack) * pack)
    grid_b = pl.cdiv(B, block_b)

    # Inputs stay f32 in HBM; any bf16 casts happen on VMEM tiles inside the kernel.
    q_in = jnp.asarray(query, f32)
    k_in = jnp.asarray(keys, f32)
    wq_t = jnp.asarray(w_q, f32).T.astype(mm_dtype)   # (H, H), resident
    wk_t = jnp.asarray(w_k, f32).T.astype(mm_dtype)   # (H, H), resident
    wv = jnp.asarray(w_v, f32)                        # (1, H) lane-dense, VPU path

    flat_k_reshape = (S % pack) == 0

    kernel = functools.partial(
        _attention_kernel, mm_dtype=mm_dtype, tanh_dtype=tanh_dtype,
        flat_k_reshape=flat_k_reshape, store_attw=return_attention_weights)

    out_shapes = [jax.ShapeDtypeStruct((B, H), f32)]
    out_specs = [pl.BlockSpec((block_b, H), lambda b: (b, 0))]
    if return_attention_weights:
        # Note: when S < 128 this store lowers to masked vst.msk; callers that only
        # consume the context should pass return_attention_weights=False.
        out_shapes.append(jax.ShapeDtypeStruct((B, S), f32))
        out_specs.append(pl.BlockSpec((block_b, S), lambda b: (b, 0)))

    grid_spec = pltpu.PrefetchScalarGridSpec(
        num_scalar_prefetch=0,
        grid=(grid_b,),
        in_specs=[
            pl.BlockSpec((block_b, H), lambda b: (b, 0)),          # query rows
            pl.BlockSpec((block_b, S, H), lambda b: (b, 0, 0)),    # keys slab
            pl.BlockSpec((H, H), lambda b: (0, 0)),                # wq_t (resident)
            pl.BlockSpec((H, H), lambda b: (0, 0)),                # wk_t (resident)
            pl.BlockSpec((1, H), lambda b: (0, 0)),                # w_v  (resident)
        ],
        out_specs=out_specs,
    )

    # Explicit scoped-VMEM request derived from the same budget (headroom-safe on
    # v7x's 64 MiB physical VMEM as well as v5e/v6e's 128 MiB).
    w_itemsize = 2 if use_bf16 else 4
    vmem_est = (block_b * _per_row_vmem_bytes(S, H, use_bf16)
                + 2 * 2 * H * H * w_itemsize + 2 * H * 4)
    vmem_limit = int(min(max(32 << 20, int(1.5 * vmem_est)), 48 << 20))

    cost = pl.CostEstimate(
        flops=2 * B * H * H + 2 * B * S * H * H + 4 * B * S * H,
        transcendentals=B * S * H + B * S + B,
        bytes_accessed=((B * H + B * S * H) * 4 + 2 * H * H * w_itemsize + H * 4
                        + B * H * 4
                        + (B * S * 4 if return_attention_weights else 0)),
    )

    outs = pl.pallas_call(
        kernel,
        out_shape=tuple(out_shapes),
        grid_spec=grid_spec,
        compiler_params=pltpu.CompilerParams(
            dimension_semantics=("parallel",),       # batch tiles shard across TCs
            vmem_limit_bytes=vmem_limit),
        cost_estimate=cost,
    )(q_in, k_in, wq_t, wk_t, wv)

    if return_attention_weights:
        return outs[0], outs[1]
    return outs[0], None


def attention_reference(query, keys, w_q, w_k, w_v):
    """Pure-JAX mirror of the PyTorch forward, for verification."""
    qp = query @ w_q.T                            # (B, H)
    kp = jnp.einsum("bsh,oh->bso", keys, w_k)     # (B, S, H)
    e = jnp.tanh(qp[:, None, :] + kp) @ w_v.T     # (B, S, 1)
    att = jax.nn.softmax(e[..., 0], axis=1)       # (B, S)
    ctx = jnp.sum(keys * att[..., None], axis=1)  # (B, H)
    return ctx, att


if __name__ == "__main__":
    B, S, H = 2, 8, 32   # batch, seq, hidden (hid_size = input_size * bi_ind)

    key = jax.random.PRNGKey(0)
    k_q, k_k, k_wq, k_wk, k_wv = jax.random.split(key, 5)

    query = jax.random.normal(k_q, (B, H), dtype=jnp.float32)
    keys = jax.random.normal(k_k, (B, S, H), dtype=jnp.float32)

    # Deterministic parameter init (PyTorch Linear weight layout: (out, in)).
    bound = 1.0 / jnp.sqrt(H)
    w_q = jax.random.uniform(k_wq, (H, H), jnp.float32, -bound, bound)
    w_k = jax.random.uniform(k_wk, (H, H), jnp.float32, -bound, bound)
    w_v = jax.random.uniform(k_wv, (1, H), jnp.float32, -bound, bound)

    # Default path is full f32 (use_bf16=False) so it matches the f32 reference.
    ctx, attw = attention_forward(query, keys, w_q, w_k, w_v)
    jax.block_until_ready((ctx, attw))

    ctx_ref, attw_ref = attention_reference(query, keys, w_q, w_k, w_v)
    assert ctx.shape == (B, H) and attw.shape == (B, S)
    assert jnp.allclose(ctx, ctx_ref, atol=1e-5, rtol=1e-5)
    assert jnp.allclose(attw, attw_ref, atol=1e-5, rtol=1e-5)

    print("KERNEL_OK")
</pallas_src>

<mosaic_0001>
module attributes {stable_mosaic.version = 11 : i64} {
  func.func @_attention_kernel(%arg0: i32, %arg1: memref<2x32xf32, #tpu.memory_space<vmem>>, %arg2: memref<2x8x32xf32, #tpu.memory_space<vmem>>, %arg3: memref<32x32xf32, #tpu.memory_space<vmem>>, %arg4: memref<32x32xf32, #tpu.memory_space<vmem>>, %arg5: memref<1x32xf32, #tpu.memory_space<vmem>>, %arg6: memref<2x32xf32, #tpu.memory_space<vmem>>, %arg7: memref<2x8xf32, #tpu.memory_space<vmem>>) attributes {dimension_semantics = [#tpu.dimension_semantics<parallel>], iteration_bounds = array<i64: 1>, scalar_prefetch = 0 : i64, scratch_operands = 0 : i64, tpu.core_type = #tpu.core_type<tc>, window_params = [{transform_indices = @transform_0, window_bounds = array<i64: 2, 32>}, {transform_indices = @transform_1, window_bounds = array<i64: 2, 8, 32>}, {pipeline_mode = #tpu.pipeline_mode<synchronous>, transform_indices = @transform_2, window_bounds = array<i64: 32, 32>}, {pipeline_mode = #tpu.pipeline_mode<synchronous>, transform_indices = @transform_3, window_bounds = array<i64: 32, 32>}, {pipeline_mode = #tpu.pipeline_mode<synchronous>, transform_indices = @transform_4, window_bounds = array<i64: 1, 32>}, {transform_indices = @transform_5, window_bounds = array<i64: 2, 32>}, {transform_indices = @transform_6, window_bounds = array<i64: 2, 8>}]} {
    %c0 = arith.constant 0 : index
    %c0_0 = arith.constant 0 : index
    %0 = vector.load %arg1[%c0, %c0_0] : memref<2x32xf32, #tpu.memory_space<vmem>>, vector<2x32xf32>
    %c0_1 = arith.constant 0 : index
    %c0_2 = arith.constant 0 : index
    %c0_3 = arith.constant 0 : index
    %1 = vector.load %arg2[%c0_1, %c0_2, %c0_3] : memref<2x8x32xf32, #tpu.memory_space<vmem>>, vector<2x8x32xf32>
    %c0_4 = arith.constant 0 : index
    %c0_5 = arith.constant 0 : index
    %2 = vector.load %arg3[%c0_4, %c0_5] : memref<32x32xf32, #tpu.memory_space<vmem>>, vector<32x32xf32>
    %cst = arith.constant dense<0.000000e+00> : vector<2x32xf32>
    %3 = tpu.matmul %0, %2, %cst {dimension_numbers = #tpu.dot_dimension_numbers<[1], [0], [0], [1], [0, 0, 1, 1], [], []>} : vector<2x32xf32>, vector<32x32xf32>, vector<2x32xf32> -> vector<2x32xf32>
    %4 = vector.shape_cast %1 : vector<2x8x32xf32> to vector<16x32xf32>
    %c0_6 = arith.constant 0 : index
    %c0_7 = arith.constant 0 : index
    %5 = vector.load %arg4[%c0_6, %c0_7] : memref<32x32xf32, #tpu.memory_space<vmem>>, vector<32x32xf32>
    %cst_8 = arith.constant dense<0.000000e+00> : vector<16x32xf32>
    %6 = tpu.matmul %4, %5, %cst_8 {dimension_numbers = #tpu.dot_dimension_numbers<[1], [0], [0], [1], [0, 0, 1, 1], [], []>} : vector<16x32xf32>, vector<32x32xf32>, vector<16x32xf32> -> vector<16x32xf32>
    %7 = vector.shape_cast %6 : vector<16x32xf32> to vector<2x8x32xf32>
    %8 = vector.shape_cast %3 : vector<2x32xf32> to vector<2x1x32xf32>
    %9 = vector.broadcast %8 : vector<2x1x32xf32> to vector<2x8x32xf32>
    %10 = arith.addf %9, %7 : vector<2x8x32xf32>
    %11 = math.tanh %10 : vector<2x8x32xf32>
    %c0_9 = arith.constant 0 : index
    %c0_10 = arith.constant 0 : index
    %12 = vector.load %arg5[%c0_9, %c0_10] : memref<1x32xf32, #tpu.memory_space<vmem>>, vector<1x32xf32>
    %13 = vector.shape_cast %12 : vector<1x32xf32> to vector<1x1x32xf32>
    %14 = vector.broadcast %13 : vector<1x1x32xf32> to vector<2x8x32xf32>
    %15 = arith.mulf %11, %14 : vector<2x8x32xf32>
    %cst_11 = arith.constant dense<0.000000e+00> : vector<2x8xf32>
    %16 = vector.multi_reduction <add>, %15, %cst_11 [2] : vector<2x8x32xf32> to vector<2x8xf32>
    %cst_12 = arith.constant dense<0xFF800000> : vector<2xf32>
    %17 = vector.multi_reduction <maximumf>, %16, %cst_12 [1] : vector<2x8xf32> to vector<2xf32>
    %18 = vector.shape_cast %17 : vector<2xf32> to vector<2x1xf32>
    %19 = vector.broadcast %18 : vector<2x1xf32> to vector<2x8xf32>
    %20 = arith.subf %16, %19 : vector<2x8xf32>
    %21 = math.exp %20 : vector<2x8xf32>
    %cst_13 = arith.constant dense<0.000000e+00> : vector<2xf32>
    %22 = vector.multi_reduction <add>, %21, %cst_13 [1] : vector<2x8xf32> to vector<2xf32>
    %23 = vector.shape_cast %22 : vector<2xf32> to vector<2x1xf32>
    %24 = tpu.reciprocal %23 {approx = true} : vector<2x1xf32> -> vector<2x1xf32>
    %25 = arith.mulf %23, %24 : vector<2x1xf32>
    %cst_14 = arith.constant 2.000000e+00 : f32
    %26 = vector.broadcast %cst_14 : f32 to vector<2x1xf32>
    %27 = arith.subf %26, %25 : vector<2x1xf32>
    %28 = arith.mulf %24, %27 : vector<2x1xf32>
    %29 = vector.broadcast %28 : vector<2x1xf32> to vector<2x8xf32>
    %30 = arith.mulf %21, %29 : vector<2x8xf32>
    %c0_15 = arith.constant 0 : index
    %c0_16 = arith.constant 0 : index
    %31 = vector.load %arg7[%c0_15, %c0_16] : memref<2x8xf32, #tpu.memory_space<vmem>>, vector<2x8xf32>
    tpu.vector_store %arg7[%c0_15, %c0_16], %30 {strides = array<i32>} : memref<2x8xf32, #tpu.memory_space<vmem>>, vector<2x8xf32>,
    %32 = vector.shape_cast %30 : vector<2x8xf32> to vector<2x8x1xf32>
    %33 = vector.broadcast %32 : vector<2x8x1xf32> to vector<2x8x32xf32>
    %34 = arith.mulf %1, %33 : vector<2x8x32xf32>
    %cst_17 = arith.constant dense<0.000000e+00> : vector<2x32xf32>
    %35 = vector.multi_reduction <add>, %34, %cst_17 [1] : vector<2x8x32xf32> to vector<2x32xf32>
    %c0_18 = arith.constant 0 : index
    %c0_19 = arith.constant 0 : index
    %36 = vector.load %arg6[%c0_18, %c0_19] : memref<2x32xf32, #tpu.memory_space<vmem>>, vector<2x32xf32>
    tpu.vector_store %arg6[%c0_18, %c0_19], %35 {strides = array<i32>} : memref<2x32xf32, #tpu.memory_space<vmem>>, vector<2x32xf32>,
    return
  }
  func.func @transform_0(%arg0: i32) -> (i32, i32) {
    %c0_i32 = arith.constant 0 : i32
    %c0_i32_0 = arith.constant 0 : i32
    return %arg0, %c0_i32 : i32, i32
  }
  func.func @transform_1(%arg0: i32) -> (i32, i32, i32) {
    %c0_i32 = arith.constant 0 : i32
    %c0_i32_0 = arith.constant 0 : i32
    %c0_i32_1 = arith.constant 0 : i32
    return %arg0, %c0_i32, %c0_i32_0 : i32, i32, i32
  }
  func.func @transform_2(%arg0: i32) -> (i32, i32) {
    %c0_i32 = arith.constant 0 : i32
    %c0_i32_0 = arith.constant 0 : i32
    %c0_i32_1 = arith.constant 0 : i32
    return %c0_i32, %c0_i32_0 : i32, i32
  }
  func.func @transform_3(%arg0: i32) -> (i32, i32) {
    %c0_i32 = arith.constant 0 : i32
    %c0_i32_0 = arith.constant 0 : i32
    %c0_i32_1 = arith.constant 0 : i32
    return %c0_i32, %c0_i32_0 : i32, i32
  }
  func.func @transform_4(%arg0: i32) -> (i32, i32) {
    %c0_i32 = arith.constant 0 : i32
    %c0_i32_0 = arith.constant 0 : i32
    %c0_i32_1 = arith.constant 0 : i32
    return %c0_i32, %c0_i32_0 : i32, i32
  }
  func.func @transform_5(%arg0: i32) -> (i32, i32) {
    %c0_i32 = arith.constant 0 : i32
    %c0_i32_0 = arith.constant 0 : i32
    return %arg0, %c0_i32 : i32, i32
  }
  func.func @transform_6(%arg0: i32) -> (i32, i32) {
    %c0_i32 = arith.constant 0 : i32
    %c0_i32_0 = arith.constant 0 : i32
    return %arg0, %c0_i32 : i32, i32
  }
}

</mosaic_0001>

<bundles_post_ra>
// kernel: tpu_custom_call.1
= control target key start
LH: loop header
LB: loop body
LE: loop exit
PB: predicated region body
PF: predicated region fallthrough
CT: control target
= control target key end

     0   :  { %12 = vsyncpa [#allocation3], 0  ;;  %s745_s0 = inlined_call_operand.hbm [shape: f32[2,32], index: 0, kind: input, shape index: {}]   ;;  %s746_s1 = inlined_call_operand.hbm [shape: f32[2,8,32], index: 1, kind: input, shape index: {}]   ;;  %s747_s2 = inlined_call_operand.hbm [shape: f32[32,32], index: 2, kind: input, shape index: {}]   ;;  %s748_s3 = inlined_call_operand.hbm [shape: f32[32,32], index: 3, kind: input, shape index: {}]   ;;  %s749_s4 = inlined_call_operand.vmem [shape: f32[1,32], index: 4, kind: input, shape index: {}]   ;;  %s750_s5 = inlined_call_operand.hbm [shape: f32[2,32], index: 5, kind: output, shape index: {0}]   ;;  %s751_s6 = inlined_call_operand.hbm [shape: f32[2,8], index: 6, kind: output, shape index: {1}]  }
   0x1   :  { %13 = vsyncpa [#allocation6], 0 }
   0x2   :  { %14 = vsyncpa [#allocation9], 0 }
   0x3   :  { %15 = vsyncpa [#allocation4], 0 }
   0x4   :  { %16 = vsyncpa [#allocation12], 0  ;;  %s634_s21 = smov [#allocation5]  }
   0x5   :  { %s32_s22 = sshll.u32 %s634_s21, 4  ;;  %s33_s22 = int_to_ptr.vmem [resolvable:$true] %s32_s22 }
   0x6   :  { %s512_s23 = scalar_lea.vmem %s33_s22, 256  ;;  %p517_p1 = scmp.lt.s32.totalorder %s33_s22, %s33_s22 }
   0x7   :  { %p513_p0 = scmp.ne.s32.totalorder %s33_s22, %s512_s23  ;;  %p518_p2 = scmp.lt.s32.totalorder %s512_s23, %s512_s23 }
   0x9   :  { %p519_p3 = por %p518_p2, %p517_p1 }
   0xb   :  { %p520_p4 = pnand %p519_p3, %p513_p0 }
   0xd   :  { %523 = shalt.err (!%p520_p4)
}
   0xe   :  { %s635_s24 = smov 128   ;;  %s636_s25 = smov 8  }
   0xf   :  { %38 = dma.hbm_to_vmem [thread:$0]  %s746_s1, 256, %s33_s22, [#allocation6], %s635_s24, %s635_s24, %s636_s25  }
  0x10   :  { %s637_s28 = smov [#allocation2]   ;;  %s638_s30 = smov [#allocation7]  }
  0x11   :  { %s23_s29 = sshll.u32 %s637_s28, 4  ;;  %s44_s7 = sshll.u32 %s638_s30, 4  ;;  %s24_s29 = int_to_ptr.vmem [resolvable:$true] %s23_s29  ;;  %s45_s7 = int_to_ptr.vmem [resolvable:$true] %s44_s7 }
  0x12   :  { %s532_s8 = scalar_lea.vmem %s24_s29, 32  ;;  %p537_p6 = scmp.lt.s32.totalorder %s24_s29, %s24_s29 }
  0x13   :  { %p533_p5 = scmp.ne.s32.totalorder %s24_s29, %s532_s8  ;;  %p538_p7 = scmp.lt.s32.totalorder %s532_s8, %s532_s8 }
  0x15   :  { %p539_p8 = por %p538_p7, %p537_p6 }
  0x17   :  { %p540_p9 = pnand %p539_p8, %p533_p5 }
  0x19   :  { %543 = shalt.err (!%p540_p9)
}
  0x1a   :  { %26 = dma.hbm_to_vmem [thread:$0]  %s745_s0, 32, %s24_s29, [#allocation3]  }
  0x1b   :  { %s552_s11 = scalar_lea.vmem %s45_s7, 512  ;;  %p557_p11 = scmp.lt.s32.totalorder %s45_s7, %s45_s7 }
  0x1c   :  { %p553_p10 = scmp.ne.s32.totalorder %s45_s7, %s552_s11  ;;  %p558_p12 = scmp.lt.s32.totalorder %s552_s11, %s552_s11 }
  0x1e   :  { %p559_p13 = por %p558_p12, %p557_p11 }
  0x20   :  { %p560_p0 = pnand %p559_p13, %p553_p10 }
  0x22   :  { %563 = shalt.err (!%p560_p0)
}
  0x23   :  { %50 = dma.hbm_to_vmem [thread:$0]  %s747_s2, 512, %s45_s7, [#allocation6], %s635_s24, %s635_s24, %s636_s25  }
  0x24   :  { %s639_s13 = smov [#allocation8]  }
  0x25   :  { %s56_s14 = sshll.u32 %s639_s13, 4  ;;  %s57_s14 = int_to_ptr.vmem [resolvable:$true] %s56_s14 }
  0x26   :  { %s572_s15 = scalar_lea.vmem %s57_s14, 512  ;;  %p577_p2 = scmp.lt.s32.totalorder %s57_s14, %s57_s14 }
  0x27   :  { %p573_p1 = scmp.ne.s32.totalorder %s57_s14, %s572_s15  ;;  %p578_p3 = scmp.lt.s32.totalorder %s572_s15, %s572_s15 }
  0x29   :  { %p579_p4 = por %p578_p3, %p577_p2 }
  0x2b   :  { %p580_p5 = pnand %p579_p4, %p573_p1 }
  0x2d   :  { %583 = shalt.err (!%p580_p5)
}
  0x2e   :  { %62 = dma.hbm_to_vmem [thread:$0]  %s748_s3, 512, %s57_s14, [#allocation9], %s635_s24, %s635_s24, %s636_s25  }
  0x2f   :  { %624 = dma.done.wait [#allocation3], 32  }
  0x30   :  { %625 = vsyncadd [#allocation3], 4294967264 }
  0x31   :  { %626 = dma.done.wait [#allocation6], 768  }
  0x32   :  { %627 = vsyncadd [#allocation6], 4294966528 }
  0x33   :  { %628 = dma.done.wait [#allocation9], 512  }
  0x34   :  { %629 = vsyncadd [#allocation9], 4294966784  ;;  %v640_v0 = vmov 0.0   ;;  %vm641_vm0 = vmmov 0   ;;  %v83_v1 = vld [vmem:[#allocation7 + $0x18] sm:$0xff]  ;;  %v82_v3 = vld [vmem:[#allocation7 + $0x10] sm:$0xff]  ;;  %v247_v14 = vlaneseq }
  0x35   :  { %458 = vmatprep.subr.mxu0 %v640_v0  ;;  %466 = vmatprep.mubr.msk.f32.mxu0 %vm641_vm0, %v640_v0  ;;  %v161_v2 = vld [vmem:[#allocation8 + $0x18] sm:$0xff]  ;;  %v160_v4 = vld [vmem:[#allocation8 + $0x10] sm:$0xff]  ;;  %v81_v5 = vld [vmem:[#allocation7 + $0x8] sm:$0xff]  ;;  %vm84_vm1 = vcmask 261120   ;;  %v642_v12 = vmov 1966171168  }
  0x36   :  { %459 = vmatpush3.msra.mxu0 %v83_v1  ;;  %469 = vmatprep.subr.mxu1 %v161_v2  ;;  %v159_v6 = vld [vmem:[#allocation8 + $0x8] sm:$0xff]  ;;  %v80_v7 = vld [vmem:[#allocation7] sm:$0xff]  ;;  %v702_v10 = vld [vmem:[#allocation5] sm:$0xff]  ;;  %v245_v13 = vunpack.c.l.s4 %v642_v12  ;;  %v711_v16 = vshrl.u32 %v247_v14, 7  ;;  %v298_v38 = vand.u32 127, %v247_v14  ;;  %vm307_vm2 = vcmask 1041409  }
  0x37   :  { %460 = vmatprep.subr.mxu0 %v640_v0  ;;  %470 = vmatpush3.msra.mxu1 %v161_v2  ;;  %v158_v8 = vld [vmem:[#allocation8] sm:$0xff]  ;;  %v77_v9 = vld [vmem:[#allocation2] sm:$0x3]  ;;  %v704_v11 = vld [vmem:[#allocation5 + $0x8] sm:$0xff]  ;;  %vm310_vm3 = vcmask 58368   ;;  %v643_v46 = vmov 0  }
  0x38   :  { %461 = vmatpush3.msra.mxu0 %v82_v3  ;;  %471 = vmatprep.subr.mxu1 %v160_v4  ;;  %v246_v15 = vunpack.c.0.s8 %v245_v13  ;;  %v715_v20 = vsub.s32 0, %v711_v16  ;;  %v446_v31 = vld [vmem:[%s749_s4] ss:$0 sm:$0xff]  ;;  %v301_v40 = vsub.s32 %v298_v38, %v711_v16  ;;  %v321_v47 = vsub.s32 1, %v711_v16  ;;  %s644_s4 = smov [#allocation11]  }
  0x39   :  { %462 = vmatprep.subr.mxu0 %v640_v0  ;;  %472 = vmatpush3.msra.mxu1 %v160_v4  ;;  %s428_s17 = sshll.u32 %s644_s4, 4  ;;  %s429_s17 = int_to_ptr.vmem [resolvable:$true] %s428_s17 }
  0x3a   :  { %463 = vmatpush3.msra.mxu0 %v81_v5  ;;  %473 = vmatprep.subr.mxu1 %v159_v6  ;;  %v249_v17 = vsub.s32 %v246_v15, %v711_v16  ;;  %s584_s18 = scalar_lea.vmem %s429_s17, 32  ;;  %p589_p7 = scmp.lt.s32.totalorder %s429_s17, %s429_s17 }
  0x3b   :  { %464 = vmatprep.subr.mxu0 %v640_v0  ;;  %474 = vmatpush3.msra.mxu1 %v159_v6  ;;  %p585_p6 = scmp.ne.s32.totalorder %s429_s17, %s584_s18  ;;  %p590_p8 = scmp.lt.s32.totalorder %s584_s18, %s584_s18 }
  0x3c   :  { %465 = vmatpush3.msra.mxu0 %v80_v7  ;;  %475 = vmatprep.subr.mxu1 %v158_v8 }
  0x3d   :  { %467 = vmatmul.mubr.msk.f32.vlgmr.msra.gmra.mxu0 %vm84_vm1, %v77_v9  ;;  %476 = vmatpush3.msra.mxu1 %v158_v8  ;;  %p591_p9 = por %p590_p8, %p589_p7 }
  0x3e   :  { %477 = vmatprep.mubr.msk.f32.mxu1 %vm84_vm1, %v702_v10  ;;  %493 = vset.pattern.permute.xlu0 %v643_v46 }
  0x3f   :  { %478 = vmatmul.mubr.msk.f32.vlgmr.msra.gmra.mxu1 %vm84_vm1, %v704_v11  ;;  %492 = vset.pattern.permute.xlu1 %v643_v46  ;;  %p592_p10 = pnand %p591_p9, %p585_p6 }
  0xfd   :  { %v154_v18 = vpop.f32.mrf.mxu0 }
  0xfe   :  { %v250_v19 = vrot.slane %v154_v18, %v249_v17 }
  0xff   :  { %v468_v21 = vpop.f32.mrf.mxu0  ;;  %v479_v22 = vpop.f32.mrf.mxu1 }
 0x100   :  { %v251_v23 = vcombine.high %v250_v19, %v250_v19  ;;  %v258_v24 = vrot.slane %v250_v19, %v249_v17 }
 0x101   :  { %v234_v27 = vpop.f32.mrf.mxu1 }
 0x102   :  { %v265_v25 = vrot.slane %v251_v23, %v249_v17  ;;  %v269_v26 = vrot.slane %v258_v24, %v715_v20 }
 0x104   :  { %v273_v28 = vrot.slane %v265_v25, %v715_v20  ;;  %v276_v29 = vadd.f32 %v269_v26, %v234_v27 }
 0x106   :  { %v277_v30 = vadd.f32 %v479_v22, %v273_v28  ;;  %494 = vtanh.f32 %v276_v29 }
 0x108   :  { %496 = vtanh.f32 %v277_v30 }
 0x113   :  { %v495_v32 = vpop.eup %494 }
 0x114   :  { %v287_v33 = vmul.f32 %v495_v32, %v446_v31 }
 0x115   :  { %v497_v34 = vpop.eup %496 }
 0x116   :  { %v289_v35 = vsel %vm84_vm1, %v287_v33, 0.0  ;;  %v288_v36 = vmul.f32 %v497_v34, %v446_v31 }
 0x117   :  { %290 = vadd.xlane.f32.xlu0 %v289_v35 }
 0x118   :  { %v292_v37 = vsel %vm84_vm1, %v288_v36, 0.0 }
 0x11b   :  { %293 = vadd.xlane.f32.xlu0 %v292_v37 }
 0x1a0   :  { %v291_v39 = vpop.xlane.xlu0 %290 }
 0x1a1   :  { %v302_v42 = vrot.slane %v291_v39, %v301_v40 }
 0x1a4   :  { %v294_v41 = vpop.xlane.xlu0 %293 }
 0x1a5   :  { %v306_v43 = vrot.slane %v294_v41, %v301_v40 }
 0x1a7   :  { %v308_v44 = vsel %vm307_vm2, %v306_v43, %v302_v42 }
 0x1a8   :  { %v311_v45 = vsel %vm310_vm3, %v308_v44, -inf }
 0x1a9   :  { %312 = vmax.xlane.f32.xlu1 %v311_v45 }
 0x232   :  { %v313_v48 = vpop.xlane.xlu1 %312 }
 0x233   :  { %v318_v49 = vrot.slane %v313_v48, %v715_v20  ;;  %v322_v50 = vrot.slane %v313_v48, %v321_v47 }
 0x235   :  { %v325_v51 = vsub.f32 %v291_v39, %v318_v49  ;;  %v326_v52 = vsub.f32 %v294_v41, %v322_v50 }
 0x237   :  { %v327_v53 = vmul.f32 1.442695, %v325_v51  ;;  %v329_v54 = vmul.f32 1.442695, %v326_v52 }
 0x239   :  { %498 = vpow2.f32 %v327_v53 }
 0x23a   :  { %500 = vpow2.f32 %v329_v54 }
 0x246   :  { %v499_v55 = vpop.eup %498 }
 0x247   :  { %v501_v56 = vpop.eup %500  ;;  %334 = vperm.xlu1 %492, %v499_v55  }
 0x248   :  { %337 = vperm.xlu0 %493, %v501_v56  }
 0x2c2   :  { %v335_v57 = vpop.permute.xlu1 %334 }
 0x2c3   :  { %v338_v58 = vpop.permute.xlu0 %337  ;;  %v342_v59 = vrot.slane %v335_v57, %v301_v40 }
 0x2c4   :  { %v346_v60 = vrot.slane %v338_v58, %v301_v40 }
 0x2c6   :  { %v347_v61 = vsel %vm307_vm2, %v346_v60, %v342_v59 }
 0x2c7   :  { %v349_v62 = vsel %vm310_vm3, %v347_v61, 0.0 }
 0x2c8   :  { %350 = vadd.xlane.f32.xlu1 %v349_v62 }
 0x351   :  { %v351_v63 = vpop.xlane.xlu1 %350 }
 0x352   :  { %502 = vrcp.f32 %v351_v63 }
 0x35f   :  { %v503_v0 = vpop.eup %502 }
 0x360   :  { %v353_v1 = vmul.f32 %v503_v0, %v351_v63 }
 0x362   :  { %v354_v2 = vsub.f32 2.0, %v353_v1 }
 0x364   :  { %v355_v3 = vmul.f32 %v503_v0, %v354_v2 }
 0x366   :  { %v360_v4 = vrot.slane %v355_v3, %v715_v20  ;;  %v364_v5 = vrot.slane %v355_v3, %v321_v47 }
 0x368   :  { %v367_v6 = vmul.f32 %v499_v55, %v360_v4  ;;  %v368_v7 = vmul.f32 %v501_v56, %v364_v5 }
 0x36a   :  { %372 = vperm.xlu0 %493, %v367_v6  }
 0x36e   :  { %375 = vperm.xlu0 %493, %v368_v7  }
 0x3e5   :  { %v373_v8 = vpop.permute.xlu0 %372 }
 0x3e6   :  { %v390_v9 = vmul.f32 %v373_v8, %v702_v10  ;;  %v380_v15 = vrot.slane %v373_v8, %v301_v40 }
 0x3e8   :  { %v392_v12 = vsel %vm84_vm1, %v390_v9, 0.0 }
 0x3e9   :  { %v393_v13 = vrot.slane %v392_v12, 4  ;;  %v376_v14 = vpop.permute.xlu0 %375 }
 0x3ea   :  { %v384_v16 = vrot.slane %v376_v14, %v301_v40  ;;  %v391_v17 = vmul.f32 %v376_v14, %v704_v11 }
 0x3eb   :  { %v394_v18 = vadd.f32 %v393_v13, %v392_v12 }
 0x3ec   :  { %v399_v19 = vsel %vm84_vm1, %v391_v17, 0.0  ;;  %v385_v20 = vsel %vm307_vm2, %v384_v16, %v380_v15 }
 0x3ed   :  { %v395_v21 = vrot.slane %v394_v18, 2  ;;  %v400_v22 = vrot.slane %v399_v19, 4  ;;  %387 = vst.msk [vmem:[#allocation11] sm:$0x3] %vm310_vm3, %v385_v20 }
 0x3ee   :  { %595 = shalt.err (!%p592_p10)
}
 0x3ef   :  { %431 = dma.vmem_to_hbm [thread:$0]  %s429_s17, 32, %s751_s6, [#allocation12]   ;;  %v396_v10 = vadd.f32 %v395_v21, %v394_v18  ;;  %v401_v11 = vadd.f32 %v400_v22, %v399_v19  ;;  %vm410_vm4 = vcmask 254976  }
 0x3f0   :  { %s645_s21 = smov [#allocation10]  }
 0x3f1   :  { %v402_v23 = vrot.slane %v401_v11, 2  ;;  %v397_v24 = vrot.slane %v396_v10, 1  ;;  %s418_s22 = sshll.u32 %s645_s21, 4  ;;  %s419_s22 = int_to_ptr.vmem [resolvable:$true] %s418_s22 }
 0x3f2   :  { %s604_s23 = scalar_lea.vmem %s419_s22, 32  ;;  %p609_p12 = scmp.lt.s32.totalorder %s419_s22, %s419_s22 }
 0x3f3   :  { %v403_v25 = vadd.f32 %v402_v23, %v401_v11  ;;  %v398_v28 = vadd.f32 %v397_v24, %v396_v10  ;;  %p605_p11 = scmp.ne.s32.totalorder %s419_s22, %s604_s23  ;;  %p610_p13 = scmp.lt.s32.totalorder %s604_s23, %s604_s23 }
 0x3f5   :  { %v404_v26 = vrot.slane %v403_v25, 1  ;;  %p611_p0 = por %p610_p13, %p609_p12 }
 0x3f7   :  { %v405_v27 = vadd.f32 %v404_v26, %v403_v25  ;;  %p612_p1 = pnand %p611_p0, %p605_p11 }
 0x3f9   :  { %v408_v29 = vsel %vm307_vm2, %v405_v27, %v398_v28 }
 0x3fa   :  { %411 = vst.msk [vmem:[#allocation10] sm:$0x3] %vm410_vm4, %v408_v29 }
 0x3fb   :  { %615 = shalt.err (!%p612_p1)
}
 0x3fc   :  { %421 = dma.vmem_to_hbm [thread:$0]  %s419_s22, 32, %s750_s5, [#allocation4]  }
 0x3fd   :  { %630 = dma.done.wait [#allocation4], 32  }
 0x3fe   :  { %631 = vsyncadd [#allocation4], 4294967264 }
 0x3ff   :  { %632 = dma.done.wait [#allocation12], 32  }
 0x400   :  { %633 = vsyncadd [#allocation12], 4294967264 }
 0x401   :  { %438 = vsyncpa [#allocation3], 1 }
 0x402   :  { %439 = vsyncpa [#allocation6], 1 }
 0x403   :  { %440 = vsyncpa [#allocation9], 1 }
 0x404   :  { %441 = vsyncpa [#allocation4], 1 }
 0x405   :  { %442 = vsyncpa [#allocation12], 1 }

</bundles_post_ra>
